<compile_context>
chip_gen: v7x
topology: tpu7x:2x2x1
jax: 0.10.0
libtpu: 0.0.40
codegen_flags: <defaults>
</compile_context>

<pallas_src>
import jax
import jax.numpy as jnp
from jax import lax
from jax.experimental import pallas as pl
from jax.experimental.pallas import tpu as pltpu

# ---- problem sizes (small, consistent with the module's forward) -----------
BS = 2            # batch size
IMG_SEQ = 16      # image token sequence length (CLIP visual seq, scaled down)
IMG_DIM = 64      # image_output_dim (encoder.visual ... ln_2 width, scaled down)
TXT_SEQ = 8       # text token sequence length
TXT_DIM = 32      # text_output_dim (encoder.transformer ... ln_2 width, scaled down)
NUM_HIDDENS = 128 # wandb.config['num_hiddens']
OUT_SEQ = IMG_SEQ + TXT_SEQ
K_TOT = IMG_DIM + TXT_DIM          # block-diagonal contraction width
M_TOT = BS * OUT_SEQ               # rows of the fused matmul (batch folded in)


def fusion_kernel(x_ref, w_ref, b_ref, o_ref):
    """Single invocation, single block-diagonal matmul.

    x_ref: (M_TOT, K_TOT)   rows already in per-batch [img; txt] order,
                            each modality in its own K slice (zeros elsewhere)
    w_ref: (K_TOT, NUM_HIDDENS)   block-diag [Wi^T; 0 / 0; Wt^T]  (lane-dense N=128)
    b_ref: (M_TOT, NUM_HIDDENS)   per-row bias (bi for img rows, bt for txt rows)
    o_ref: (M_TOT, NUM_HIDDENS)
    """
    o_ref[...] = (
        lax.dot_general(
            x_ref[...], w_ref[...],
            dimension_numbers=(((1,), (0,)), ((), ())),   # standard A @ W on the MXU
            preferred_element_type=jnp.float32,
        )
        + b_ref[...]
    ).astype(o_ref.dtype)


def pack_activations(image_features, text_features):
    """Pack both modalities into one (M_TOT, K_TOT) activation whose rows are in
    per-batch [img; txt] concat order; each modality occupies its own K slice
    (zero elsewhere) so one block-diagonal matmul reproduces both Linears."""
    img_p = jnp.pad(image_features, ((0, 0), (0, 0), (0, TXT_DIM)))   # (BS, IMG_SEQ, K_TOT)
    txt_p = jnp.pad(text_features, ((0, 0), (0, 0), (IMG_DIM, 0)))    # (BS, TXT_SEQ, K_TOT)
    x = jnp.concatenate([img_p, txt_p], axis=1)                       # (BS, OUT_SEQ, K_TOT)
    return x.reshape(M_TOT, K_TOT)


def multimodal_fusion(image_features, text_features, w_blk, b_rows):
    """image_features: (BS, IMG_SEQ, IMG_DIM) f32
       text_features:  (BS, TXT_SEQ, TXT_DIM) f32
       w_blk:  (K_TOT, NUM_HIDDENS) block-diagonal packed weight (built once).
       b_rows: (M_TOT, NUM_HIDDENS) per-row bias (built once).
       returns (BS, OUT_SEQ, NUM_HIDDENS) f32
               = cat([img @ Wi^T + bi, txt @ Wt^T + bt], axis=1)
    """
    x = pack_activations(image_features, text_features)

    vmem = pl.BlockSpec(memory_space=pltpu.MemorySpace.VMEM)
    cost = pl.CostEstimate(
        flops=2 * M_TOT * K_TOT * NUM_HIDDENS + M_TOT * NUM_HIDDENS,
        transcendentals=0,
        bytes_accessed=4 * (M_TOT * K_TOT            # activations
                            + K_TOT * NUM_HIDDENS    # packed weight
                            + M_TOT * NUM_HIDDENS    # bias
                            + M_TOT * NUM_HIDDENS),  # output
    )
    out2d = pl.pallas_call(
        fusion_kernel,
        out_shape=jax.ShapeDtypeStruct((M_TOT, NUM_HIDDENS), jnp.float32),
        in_specs=[vmem, vmem, vmem],
        out_specs=vmem,
        cost_estimate=cost,
    )(x, w_blk, b_rows)

    # Free contiguous reshape back to the module's (batch, seq, hidden) layout.
    return out2d.reshape(BS, OUT_SEQ, NUM_HIDDENS)


def xavier_uniform(key, shape):
    """Matches nn.init.xavier_uniform_ for a (fan_out, fan_in) Linear weight."""
    fan_out, fan_in = shape
    limit = jnp.sqrt(6.0 / (fan_in + fan_out))
    return jax.random.uniform(key, shape, jnp.float32, minval=-limit, maxval=limit)


def build_fused_params(w_img, b_img, w_txt, b_txt):
    """One-time host-side packing of PyTorch-layout Linear params into the
    block-diagonal / per-row layout the kernel consumes (parameters, so this is
    not a per-call cost)."""
    w_blk = jnp.zeros((K_TOT, NUM_HIDDENS), jnp.float32)
    w_blk = w_blk.at[:IMG_DIM, :].set(w_img.T)     # img K slice
    w_blk = w_blk.at[IMG_DIM:, :].set(w_txt.T)     # txt K slice
    b_seq = jnp.concatenate(
        [jnp.tile(b_img.reshape(1, NUM_HIDDENS), (IMG_SEQ, 1)),
         jnp.tile(b_txt.reshape(1, NUM_HIDDENS), (TXT_SEQ, 1))], axis=0)   # (OUT_SEQ, H)
    b_rows = jnp.tile(b_seq, (BS, 1))                                      # (M_TOT, H)
    return w_blk, b_rows


def forward(image_features, text_features, pose, enc_valid_len, params):
    """Mirrors MyNetwork.forward on the trainable / in-module compute path."""
    fused = multimodal_fusion(
        image_features, text_features, params["w_blk"], params["b_rows"],
    )
    # TODO(synk): external `decoder.init_state` / `decoder(pose, dec_state)` have no
    # definition in the reference code; pass the fused encoder outputs through.
    dec_state = (fused, enc_valid_len)
    return fused, dec_state


if __name__ == "__main__":
    key = jax.random.PRNGKey(0)
    k_img, k_txt, k_wi, k_wt, k_bi, k_bt, k_pose = jax.random.split(key, 7)

    # Synthetic stand-ins for CLIP encoder sequence outputs (cast to f32 as in
    # `.type(torch.float32)` in the reference forward).
    image_features = jax.random.normal(k_img, (BS, IMG_SEQ, IMG_DIM), jnp.float32)
    text_features = jax.random.normal(k_txt, (BS, TXT_SEQ, TXT_DIM), jnp.float32)
    pose = jax.random.normal(k_pose, (BS, 4, 2, 5, 3), jnp.float32)  # unused by fusion
    enc_valid_len = jnp.full((BS,), OUT_SEQ, jnp.int32)

    # PyTorch Linear layout: (out_features, in_features) — packed once below.
    w_img = xavier_uniform(k_wi, (NUM_HIDDENS, IMG_DIM))
    b_img = jax.random.uniform(
        k_bi, (NUM_HIDDENS,), jnp.float32,
        minval=-1.0 / jnp.sqrt(IMG_DIM), maxval=1.0 / jnp.sqrt(IMG_DIM))
    w_txt = xavier_uniform(k_wt, (NUM_HIDDENS, TXT_DIM))
    b_txt = jax.random.uniform(
        k_bt, (NUM_HIDDENS,), jnp.float32,
        minval=-1.0 / jnp.sqrt(TXT_DIM), maxval=1.0 / jnp.sqrt(TXT_DIM))

    w_blk, b_rows = build_fused_params(w_img, b_img, w_txt, b_txt)
    params = {"w_blk": w_blk, "b_rows": b_rows}

    fused, dec_state = forward(image_features, text_features, pose, enc_valid_len, params)
    fused = jax.block_until_ready(fused)

    # Reference check against plain JAX (Linear + concat semantics).
    ref_img = image_features @ w_img.T + b_img
    ref_txt = text_features @ w_txt.T + b_txt
    ref = jnp.concatenate([ref_img, ref_txt], axis=1)
    assert fused.shape == (BS, OUT_SEQ, NUM_HIDDENS)
    assert jnp.allclose(fused, ref, atol=1e-5, rtol=1e-5)

    print("KERNEL_OK")
</pallas_src>

<mosaic_0001>
module attributes {stable_mosaic.version = 11 : i64} {
  func.func @fusion_kernel(%arg0: memref<48x96xf32, #tpu.memory_space<vmem>>, %arg1: memref<96x128xf32, #tpu.memory_space<vmem>>, %arg2: memref<48x128xf32, #tpu.memory_space<vmem>>, %arg3: memref<48x128xf32, #tpu.memory_space<vmem>>) attributes {dimension_semantics = [], scalar_prefetch = 0 : i64, scratch_operands = 0 : i64, tpu.core_type = #tpu.core_type<tc>} {
    %c0 = arith.constant 0 : index
    %c0_0 = arith.constant 0 : index
    %0 = vector.load %arg0[%c0, %c0_0] : memref<48x96xf32, #tpu.memory_space<vmem>>, vector<48x96xf32>
    %c0_1 = arith.constant 0 : index
    %c0_2 = arith.constant 0 : index
    %1 = vector.load %arg1[%c0_1, %c0_2] : memref<96x128xf32, #tpu.memory_space<vmem>>, vector<96x128xf32>
    %cst = arith.constant dense<0.000000e+00> : vector<48x128xf32>
    %2 = tpu.matmul %0, %1, %cst {dimension_numbers = #tpu.dot_dimension_numbers<[1], [0], [0], [1], [0, 0, 1, 1], [], []>} : vector<48x96xf32>, vector<96x128xf32>, vector<48x128xf32> -> vector<48x128xf32>
    %c0_3 = arith.constant 0 : index
    %c0_4 = arith.constant 0 : index
    %3 = vector.load %arg2[%c0_3, %c0_4] : memref<48x128xf32, #tpu.memory_space<vmem>>, vector<48x128xf32>
    %4 = arith.addf %2, %3 : vector<48x128xf32>
    %c0_5 = arith.constant 0 : index
    %c0_6 = arith.constant 0 : index
    %5 = vector.load %arg3[%c0_5, %c0_6] : memref<48x128xf32, #tpu.memory_space<vmem>>, vector<48x128xf32>
    tpu.vector_store %arg3[%c0_5, %c0_6], %4 {strides = array<i32>} : memref<48x128xf32, #tpu.memory_space<vmem>>, vector<48x128xf32>,
    return
  }
}

</mosaic_0001>

<bundles_post_ra>
// kernel: tpu_custom_call.1
= control target key start
LH: loop header
LB: loop body
LE: loop exit
PB: predicated region body
PF: predicated region fallthrough
CT: control target
= control target key end

     0   :  { %8 = vsyncpa [#allocation3], 0  ;;  %s510_s0 = inlined_call_operand.hbm [shape: f32[48,96], index: 0, kind: input, shape index: {}]   ;;  %s511_s1 = inlined_call_operand.hbm [shape: f32[96,128], index: 1, kind: input, shape index: {}]   ;;  %s512_s2 = inlined_call_operand.hbm [shape: f32[48,128], index: 2, kind: input, shape index: {}]   ;;  %s513_s3 = inlined_call_operand.hbm [shape: f32[48,128], index: 3, kind: output, shape index: {}]  }
   0x1   :  { %9 = vsyncpa [#allocation6], 0 }
   0x2   :  { %10 = vsyncpa [#allocation4], 0  ;;  %s411_s12 = smov [#allocation5]   ;;  %s412_s14 = smov [#allocation2]  }
   0x3   :  { %s28_s13 = sshll.u32 %s411_s12, 4  ;;  %s16_s15 = sshll.u32 %s412_s14, 4  ;;  %s29_s13 = int_to_ptr.vmem [resolvable:$true] %s28_s13  ;;  %s437_s15 = int_to_ptr.vmem [resolvable:$true] %s16_s15 }
   0x4   :  { %s317_s18 = scalar_lea.hbm %s511_s1, 1536 }
   0x5   :  { %p318_p0 = scmp.ne.s32.totalorder %s511_s1, %s317_s18  ;;  %p321_p1 = scmp.lt.u32.totalorder %s317_s18, %s511_s1 }
   0x7   :  { %p323_p2 = pnand %p321_p1, %p318_p0 }
   0x9   :  { %326 = shalt.err (!%p323_p2)
}
   0xa   :  { %s327_s23 = scalar_lea.vmem %s29_s13, 1536  ;;  %p332_p4 = scmp.lt.s32.totalorder %s29_s13, %s29_s13 }
   0xb   :  { %p328_p3 = scmp.ne.s32.totalorder %s29_s13, %s327_s23  ;;  %p333_p5 = scmp.lt.s32.totalorder %s327_s23, %s327_s23 }
   0xd   :  { %p334_p6 = por %p333_p5, %p332_p4 }
   0xf   :  { %p335_p7 = pnand %p334_p6, %p328_p3 }
  0x11   :  { %338 = shalt.err (!%p335_p7)
}
  0x12   :  { %s413_s24 = smov 128   ;;  %s414_s25 = smov 8  }
  0x13   :  { %34 = dma.hbm_to_vmem [thread:$0]  %s511_s1, 1536, %s29_s13, [#allocation6], %s413_s24, %s413_s24, %s414_s25  }
  0x14   :  { %s339_s30 = scalar_lea.hbm %s510_s0, 768 }
  0x15   :  { %p340_p8 = scmp.ne.s32.totalorder %s510_s0, %s339_s30  ;;  %p343_p9 = scmp.lt.u32.totalorder %s339_s30, %s510_s0 }
  0x17   :  { %p345_p10 = pnand %p343_p9, %p340_p8 }
  0x19   :  { %348 = shalt.err (!%p345_p10)
}
  0x1a   :  { %s349_s8 = scalar_lea.vmem %s437_s15, 768  ;;  %p354_p12 = scmp.lt.s32.totalorder %s437_s15, %s437_s15 }
  0x1b   :  { %p350_p11 = scmp.ne.s32.totalorder %s437_s15, %s349_s8  ;;  %p355_p13 = scmp.lt.s32.totalorder %s349_s8, %s349_s8 }
  0x1d   :  { %p356_p0 = por %p355_p13, %p354_p12 }
  0x1f   :  { %p357_p1 = pnand %p356_p0, %p350_p11 }
  0x21   :  { %360 = shalt.err (!%p357_p1)
}
  0x22   :  { %22 = dma.hbm_to_vmem [thread:$0]  %s510_s0, 768, %s437_s15, [#allocation3], %s413_s24, %s413_s24, %s414_s25  }
  0x23   :  { %s415_s10 = smov [#allocation7]   ;;  %s361_s14 = scalar_lea.hbm %s512_s2, 768 }
  0x24   :  { %s40_s11 = sshll.u32 %s415_s10, 4  ;;  %p362_p2 = scmp.ne.s32.totalorder %s512_s2, %s361_s14  ;;  %s41_s11 = int_to_ptr.vmem [resolvable:$true] %s40_s11 }
  0x25   :  { %p365_p3 = scmp.lt.u32.totalorder %s361_s14, %s512_s2 }
  0x27   :  { %p367_p4 = pnand %p365_p3, %p362_p2 }
  0x29   :  { %370 = shalt.err (!%p367_p4)
}
  0x2a   :  { %s371_s20 = scalar_lea.vmem %s41_s11, 768  ;;  %p376_p6 = scmp.lt.s32.totalorder %s41_s11, %s41_s11 }
  0x2b   :  { %p372_p5 = scmp.ne.s32.totalorder %s41_s11, %s371_s20  ;;  %p377_p7 = scmp.lt.s32.totalorder %s371_s20, %s371_s20 }
  0x2d   :  { %p378_p8 = por %p377_p7, %p376_p6 }
  0x2f   :  { %p379_p9 = pnand %p378_p8, %p372_p5 }
  0x31   :  { %382 = shalt.err (!%p379_p9)
}
  0x32   :  { %46 = dma.hbm_to_vmem [thread:$0]  %s512_s2, 768, %s41_s11, [#allocation6], %s413_s24, %s413_s24, %s414_s25  }
  0x33   :  { %405 = dma.done.wait [#allocation3], 768  }
  0x34   :  { %406 = vsyncadd [#allocation3], 4294966528 }
  0x35   :  { %407 = dma.done.wait [#allocation6], 2304  }
  0x36   :  { %408 = vsyncadd [#allocation6], 4294964992  ;;  %v62_v0 = vld [vmem:[#allocation5] sm:$0xff]  ;;  %v63_v1 = vld [vmem:[#allocation5 + $0x8] sm:$0xff]  ;;  %vm80_vm0 = vcmask 785408   ;;  %s416_s2 = smov [#allocation8]  }
  0x37   :  { %v64_v2 = vld [vmem:[#allocation5 + $0x10] sm:$0xff]  ;;  %v275_v3 = vpack.c.bf16 %v63_v1, %v62_v0  ;;  %v65_v4 = vld [vmem:[#allocation5 + $0x18] sm:$0xff]  ;;  %v66_v6 = vld [vmem:[#allocation5 + $0x20] sm:$0xff]  ;;  %s205_s21 = sshll.u32 %s416_s2, 4  ;;  %s206_s21 = int_to_ptr.vmem [resolvable:$true] %s205_s21 }
  0x38   :  { %v279_v5 = vpack.c.bf16 %v65_v4, %v64_v2  ;;  %v67_v7 = vld [vmem:[#allocation5 + $0x28] sm:$0xff]  ;;  %v58_v8 = vld [vmem:[#allocation2 + $0x10] sm:$0xff]  ;;  %v56_v9 = vld [vmem:[#allocation2] sm:$0xff]  ;;  %s383_s22 = scalar_lea.vmem %s206_s21, 768  ;;  %p388_p11 = scmp.lt.s32.totalorder %s206_s21, %s206_s21 }
  0x39   :  { %299 = vmatprep.subr.bf16.mxu1 %v275_v3  ;;  %276 = vmatprep.subr.bf16.mxu0 %v275_v3  ;;  %v283_v10 = vpack.c.bf16 %v67_v7, %v66_v6  ;;  %v68_v11 = vld [vmem:[#allocation5 + $0x30] sm:$0xff]  ;;  %v69_v12 = vld [vmem:[#allocation5 + $0x38] sm:$0xff]  ;;  %v70_v14 = vld [vmem:[#allocation5 + $0x40] sm:$0xff]  ;;  %p384_p10 = scmp.ne.s32.totalorder %s206_s21, %s383_s22  ;;  %p389_p12 = scmp.lt.s32.totalorder %s383_s22, %s383_s22 }
  0x3a   :  { %305 = vmatpush3.bf16.msra.mxu1 %v275_v3  ;;  %278 = vmatpush3.bf16.msra.mxu0 %v275_v3  ;;  %v287_v13 = vpack.c.bf16 %v69_v12, %v68_v11  ;;  %v71_v15 = vld [vmem:[#allocation5 + $0x48] sm:$0xff]  ;;  %v72_v17 = vld [vmem:[#allocation5 + $0x50] sm:$0xff]  ;;  %v73_v18 = vld [vmem:[#allocation5 + $0x58] sm:$0xff] }
  0x3b   :  { %300 = vmatprep.subr.bf16.mxu1 %v279_v5  ;;  %280 = vmatprep.subr.bf16.mxu0 %v279_v5  ;;  %v291_v16 = vpack.c.bf16 %v71_v15, %v70_v14  ;;  %v295_v19 = vpack.c.bf16 %v73_v18, %v72_v17  ;;  %v59_v20 = vld [vmem:[#allocation2 + $0x18] sm:$0xff]  ;;  %v57_v21 = vld [vmem:[#allocation2 + $0x8] sm:$0xff]  ;;  %v60_v22 = vld [vmem:[#allocation2 + $0x20] sm:$0xff]  ;;  %p390_p13 = por %p389_p12, %p388_p11 }
  0x3c   :  { %269 = vmatprep.mubr.msk.f32.mxu1 %vm80_vm0, %v58_v8  ;;  %266 = vmatprep.mubr.msk.f32.mxu0 %vm80_vm0, %v56_v9  ;;  %v61_v23 = vld [vmem:[#allocation2 + $0x28] sm:$0xff]  ;;  %v75_v25 = vld [vmem:[#allocation7 + $0x8] sm:$0xff]  ;;  %v76_v26 = vld [vmem:[#allocation7 + $0x10] sm:$0xff] }
  0x3d   :  { %v77_v24 = vld [vmem:[#allocation7 + $0x18] sm:$0xff]  ;;  %v74_v27 = vld [vmem:[#allocation7] sm:$0xff]  ;;  %v79_v36 = vld [vmem:[#allocation7 + $0x28] sm:$0xff]  ;;  %p391_p0 = pnand %p390_p13, %p384_p10 }
  0x3e   :  { %306 = vmatpush3.bf16.msra.mxu1 %v279_v5  ;;  %282 = vmatpush3.bf16.msra.mxu0 %v279_v5  ;;  %v78_v37 = vld [vmem:[#allocation7 + $0x20] sm:$0xff] }
  0x3f   :  { %301 = vmatprep.subr.bf16.mxu1 %v283_v10  ;;  %284 = vmatprep.subr.bf16.mxu0 %v283_v10 }
  0x42   :  { %307 = vmatpush3.bf16.msra.mxu1 %v283_v10  ;;  %286 = vmatpush3.bf16.msra.mxu0 %v283_v10 }
  0x43   :  { %302 = vmatprep.subr.bf16.mxu1 %v287_v13  ;;  %288 = vmatprep.subr.bf16.mxu0 %v287_v13 }
  0x46   :  { %308 = vmatpush3.bf16.msra.mxu1 %v287_v13  ;;  %290 = vmatpush3.bf16.msra.mxu0 %v287_v13 }
  0x47   :  { %303 = vmatprep.subr.bf16.mxu1 %v291_v16  ;;  %292 = vmatprep.subr.bf16.mxu0 %v291_v16 }
  0x4a   :  { %309 = vmatpush3.bf16.msra.mxu1 %v291_v16  ;;  %294 = vmatpush3.bf16.msra.mxu0 %v291_v16 }
  0x4b   :  { %304 = vmatprep.subr.bf16.mxu1 %v295_v19  ;;  %296 = vmatprep.subr.bf16.mxu0 %v295_v19 }
  0x4e   :  { %310 = vmatpush3.bf16.msra.mxu1 %v295_v19  ;;  %298 = vmatpush3.bf16.msra.mxu0 %v295_v19 }
  0x51   :  { %270 = vmatmul.mubr.msk.f32.vlgmr.msra.gmra.mrb[0].mxu1 %vm80_vm0, %v59_v20  ;;  %267 = vmatmul.mubr.msk.f32.vlgmr.msra.gmra.mrb[0].mxu0 %vm80_vm0, %v57_v21 }
  0x52   :  { %272 = vmatprep.mubr.msk.f32.mxu1 %vm80_vm0, %v60_v22 }
  0x55   :  { %273 = vmatmul.mubr.msk.f32.gmra.mrb[2].mxu1 %vm80_vm0, %v61_v23 }
 0x124   :  { %v271_v28 = vpop.f32.mrb[0].mxu1  ;;  %v268_v29 = vpop.f32.mrb[0].mxu0 }
 0x125   :  { %v181_v30 = vadd.f32 %v271_v28, %v77_v24  ;;  %v175_v31 = vpop.f32.mrb[1].mxu1  ;;  %v171_v32 = vadd.f32 %v268_v29, %v75_v25  ;;  %v165_v33 = vpop.f32.mrb[1].mxu0 }
 0x126   :  { %v176_v34 = vadd.f32 %v175_v31, %v76_v26  ;;  %v166_v35 = vadd.f32 %v165_v33, %v74_v27 }
 0x127   :  { %197 = vst [vmem:[#allocation8 + $0x18] sm:$0xff] %v181_v30  ;;  %195 = vst [vmem:[#allocation8 + $0x8] sm:$0xff] %v171_v32 }
 0x128   :  { %196 = vst [vmem:[#allocation8 + $0x10] sm:$0xff] %v176_v34  ;;  %194 = vst [vmem:[#allocation8] sm:$0xff] %v166_v35  ;;  %v274_v38 = vpop.f32.mrb[2].mxu1 }
 0x129   :  { %v191_v39 = vadd.f32 %v274_v38, %v79_v36  ;;  %v185_v40 = vpop.f32.mrb[3].mxu1 }
 0x12a   :  { %v186_v41 = vadd.f32 %v185_v40, %v78_v37 }
 0x12b   :  { %199 = vst [vmem:[#allocation8 + $0x28] sm:$0xff] %v191_v39 }
 0x12c   :  { %198 = vst [vmem:[#allocation8 + $0x20] sm:$0xff] %v186_v41 }
 0x12d   :  { %394 = shalt.err (!%p391_p0)
}
 0x12e   :  { %s395_s27 = scalar_lea.hbm %s513_s3, 768 }
 0x12f   :  { %p396_p1 = scmp.ne.s32.totalorder %s513_s3, %s395_s27  ;;  %p399_p2 = scmp.lt.u32.totalorder %s395_s27, %s513_s3 }
 0x131   :  { %p401_p3 = pnand %p399_p2, %p396_p1 }
 0x133   :  { %404 = shalt.err (!%p401_p3)
}
 0x134   :  { %211 = dma.vmem_to_hbm [thread:$0]  %s206_s21, 768, %s513_s3, [#allocation4], %s413_s24, %s413_s24, %s414_s25  }
 0x135   :  { %409 = dma.done.wait [#allocation4], 768  }
 0x136   :  { %410 = vsyncadd [#allocation4], 4294966528 }
 0x137   :  { %215 = vsyncpa [#allocation3], 1 }
 0x138   :  { %216 = vsyncpa [#allocation6], 1 }
 0x139   :  { %217 = vsyncpa [#allocation4], 1 }

</bundles_post_ra>
